<compile_context>
chip_gen: v7x
topology: tpu7x:2x2x1
jax: 0.10.0
libtpu: 0.0.40
codegen_flags: <defaults>
</compile_context>

<pallas_src>
from functools import partial

import numpy as np
import jax
import jax.numpy as jnp
from jax.experimental import pallas as pl
from jax.experimental.pallas import tpu as pltpu

LANE = 128
BBOX_XFORM_CLIP = float(np.log(1000.0 / 16.0))   # torchvision BoxCoder clip

# Explicit scoped-VMEM budget (feedback): defaults are 16/32/32 MiB scoped on
# v5e/v6e/v7x.  48 MiB leaves headroom below v7x's 64 MiB physical VMEM and is
# far below the 128 MiB on v5e/v6e.
VMEM_LIMIT_BYTES = 48 * 1024 * 1024


def _round_up(x, m):
    return ((x + m - 1) // m) * m


def _cparams(*sems):
    return pltpu.CompilerParams(dimension_semantics=sems,
                                vmem_limit_bytes=VMEM_LIMIT_BYTES)


# ---------------------------------------------------------------------------
# Pallas kernels
# ---------------------------------------------------------------------------
def _linear_kernel(x_ref, w_ref, b_ref, o_ref, acc_ref, *, relu, nk):
    """K-tiled matmul: f32 VMEM accumulator, init/finalize via pl.when."""
    k = pl.program_id(1)

    @pl.when(k == 0)
    def _():
        acc_ref[...] = jnp.zeros_like(acc_ref)

    acc_ref[...] += jnp.dot(x_ref[...].astype(jnp.bfloat16), w_ref[...],
                            preferred_element_type=jnp.float32)

    @pl.when(k == nk - 1)
    def _():
        r = acc_ref[...] + b_ref[...]
        if relu:
            r = jnp.maximum(r, 0.0)
        o_ref[...] = r.astype(o_ref.dtype)


def pallas_linear(x, w, b=None, relu=False, block_m=256, block_k=512,
                  out_dtype=jnp.float32):
    """y = x @ w + b (optional ReLU).  x:(M,K) f32, w:(K,N) bf16, b:(N,) f32.

    * M tile rounded to 16 rows (bf16 sublane pairs); pick block_m so the M
      grid has >=2 'parallel' blocks (both v7x TensorCores).
    * K grid axis ('arbitrary') with an f32 VMEM accumulator so large weights
      never need a single (K,N) VMEM block; K tiles are 256-aligned.
    * bias spec is grid-invariant (single logical fetch; at real sizes mark it
      pl.Buffered(1) to drop its double buffer)."""
    M, K = x.shape
    N = w.shape[1]
    if b is None:
        b = jnp.zeros((N,), jnp.float32)
    bm = min(block_m, _round_up(M, 16))
    Mp = _round_up(M, bm)
    if K <= block_k:
        bk, Kp = K, K
    else:
        bk = block_k                       # multiple of 256 (lane constraint)
        Kp = _round_up(K, bk)
    nk = Kp // bk
    xw = x
    if Mp != M or Kp != K:
        xw = jnp.pad(xw, ((0, Mp - M), (0, Kp - K)))
    ww = w.astype(jnp.bfloat16)
    if Kp != K:
        ww = jnp.pad(ww, ((0, Kp - K), (0, 0)))
    out = pl.pallas_call(
        partial(_linear_kernel, relu=relu, nk=nk),
        out_shape=jax.ShapeDtypeStruct((Mp, N), out_dtype),
        grid=(Mp // bm, nk),
        in_specs=[
            pl.BlockSpec((bm, bk), lambda i, k: (i, k)),
            pl.BlockSpec((bk, N), lambda i, k: (k, 0)),
            pl.BlockSpec((1, N), lambda i, k: (0, 0)),      # grid-invariant
        ],
        out_specs=pl.BlockSpec((bm, N), lambda i, k: (i, 0)),
        scratch_shapes=[pltpu.VMEM((bm, N), jnp.float32)],
        compiler_params=_cparams("parallel", "arbitrary"),
    )(xw, ww, b.astype(jnp.float32).reshape(1, N))
    return out[:M] if Mp != M else out


def _rpn_conv_heads_kernel(x_ref, w9_ref, bc_ref, wh_ref, bh_ref, o_ref, *,
                           Wp, rows_out):
    """3x3 conv (9 row-shifted matmuls) + bias + ReLU + fused RPN cls/reg
    heads.  The conv feature map never leaves VMEM (feedback: head fusion)."""
    # tap (0,0): accumulator initialised with the conv bias folded in.
    acc = bc_ref[...] + jnp.dot(
        x_ref[0:rows_out, :].astype(jnp.bfloat16), w9_ref[0],
        preferred_element_type=jnp.float32)
    for dy in range(3):
        for dx in range(3):
            if dy == 0 and dx == 0:
                continue
            off = dy * Wp + dx                   # static row shift per tap
            acc = acc + jnp.dot(
                x_ref[off:off + rows_out, :].astype(jnp.bfloat16),
                w9_ref[dy * 3 + dx],
                preferred_element_type=jnp.float32)
    t = jnp.maximum(acc, 0.0).astype(jnp.bfloat16)          # conv output
    o_ref[...] = (jnp.dot(t, wh_ref[...], preferred_element_type=jnp.float32)
                  + bh_ref[...])


def pallas_rpn_conv_heads(feat_nhwc, w9, b_conv, w_heads, b_heads):
    """3x3 conv (pad 1, stride 1) fused with the RPN cls+reg heads.

    The padded feature map is flattened to (Hp*Wp, C); tap (dy,dx) is a
    static row shift of dy*Wp+dx, so no 9x im2col buffer is written to HBM.
    grid=(B,) gives >=2 parallel blocks for batch>=2.
    TODO(synk): at detector-scale feature maps tile spatially into row bands
    with a 2-row halo (whole-image blocks would exceed v7x's 64 MiB VMEM)."""
    B, Hf, Wf, Cp = feat_nhwc.shape
    Nc = w9.shape[-1]
    Nh = w_heads.shape[-1]
    Hp, Wp = Hf + 2, Wf + 2
    rows_out = _round_up(Hf * Wp, 8)
    rows_in = _round_up(2 * Wp + 2 + rows_out, 8)            # max tap + span
    xp = jnp.pad(feat_nhwc, ((0, 0), (1, 1), (1, 1), (0, 0)))
    xf = xp.reshape(B, Hp * Wp, Cp)
    xf = jnp.pad(xf, ((0, 0), (0, rows_in - Hp * Wp), (0, 0)))
    xf = xf.reshape(B * rows_in, Cp)
    out = pl.pallas_call(
        partial(_rpn_conv_heads_kernel, Wp=Wp, rows_out=rows_out),
        out_shape=jax.ShapeDtypeStruct((B * rows_out, Nh), jnp.float32),
        grid=(B,),
        in_specs=[
            pl.BlockSpec((rows_in, Cp), lambda b: (b, 0)),
            pl.BlockSpec((9, Cp, Nc), lambda b: (0, 0, 0)),  # grid-invariant
            pl.BlockSpec((1, Nc), lambda b: (0, 0)),
            pl.BlockSpec((Nc, Nh), lambda b: (0, 0)),
            pl.BlockSpec((1, Nh), lambda b: (0, 0)),
        ],
        out_specs=pl.BlockSpec((rows_out, Nh), lambda b: (b, 0)),
        compiler_params=_cparams("parallel"),
    )(xf, w9, b_conv.reshape(1, Nc).astype(jnp.float32),
      w_heads, b_heads.reshape(1, Nh).astype(jnp.float32))
    out = out.reshape(B, rows_out, Nh)[:, :Hf * Wp]
    # columns x >= Wf are conv over the width halo -> discard.
    return out.reshape(B, Hf, Wp, Nh)[:, :, :Wf, :]


def _roi_gather_kernel(idx_ref, wts_ref, feat_ref, out_ref, *, bn):
    """RoI-Align bilinear gather.  idx_ref: SMEM (4, Mp) int32 flat feature
    row index of each corner; wts_ref: (bn, 4) f32 bilinear weights;
    feat_ref: full (Rf, 128) feature slab resident in VMEM."""
    i = pl.program_id(0)

    def body(j, carry):
        m = i * bn + j
        r = (wts_ref[pl.ds(j, 1), 0:1] * feat_ref[pl.ds(idx_ref[0, m], 1), :]
             + wts_ref[pl.ds(j, 1), 1:2] * feat_ref[pl.ds(idx_ref[1, m], 1), :]
             + wts_ref[pl.ds(j, 1), 2:3] * feat_ref[pl.ds(idx_ref[2, m], 1), :]
             + wts_ref[pl.ds(j, 1), 3:4] * feat_ref[pl.ds(idx_ref[3, m], 1), :])
        out_ref[pl.ds(j, 1), :] = r
        return carry

    jax.lax.fori_loop(0, bn, body, 0, unroll=True)


def pallas_roi_gather(idx, wts, feat_flat, block_n=32):
    """RoI-Align samples via scalar-prefetch gather (no dense one-hot matmul).

    idx: (4, M) int32, wts: (M, 4) f32, feat_flat: (Rf, 128) f32.
    Returns (M, 128) f32 bilinear samples.
    TODO(synk): at real feature-map sizes keep the slab in HBM (pl.ANY) and
    double-buffer per-corner row DMAs instead of a VMEM-resident block."""
    M = idx.shape[1]
    Rf, Cp = feat_flat.shape
    bn = min(block_n, _round_up(M, 8))
    Mp = _round_up(M, bn)
    if Mp != M:
        idx = jnp.pad(idx, ((0, 0), (0, Mp - M)))
        wts = jnp.pad(wts, ((0, Mp - M), (0, 0)))
    out = pl.pallas_call(
        partial(_roi_gather_kernel, bn=bn),
        out_shape=jax.ShapeDtypeStruct((Mp, Cp), jnp.float32),
        grid_spec=pltpu.PrefetchScalarGridSpec(
            num_scalar_prefetch=1,
            grid=(Mp // bn,),
            in_specs=[
                pl.BlockSpec((bn, 4), lambda i, idx_ref: (i, 0)),
                pl.BlockSpec((Rf, Cp), lambda i, idx_ref: (0, 0)),
            ],
            out_specs=pl.BlockSpec((bn, Cp), lambda i, idx_ref: (i, 0)),
        ),
        compiler_params=_cparams("parallel"),
    )(idx.astype(jnp.int32), wts.astype(jnp.float32),
      feat_flat.astype(jnp.float32))
    return out[:M] if Mp != M else out


def _roi_heads_kernel(x_ref, w1_ref, b1_ref, w2_ref, b2_ref, o_ref):
    """roi_head (linear+ReLU) and final cls/reg heads fused; the 128-wide box
    feature slab stays in VMEM between the two matmuls (no HBM round trip)."""
    h = jnp.dot(x_ref[...].astype(jnp.bfloat16), w1_ref[...],
                preferred_element_type=jnp.float32)
    h = jnp.maximum(h + b1_ref[...], 0.0)
    o = jnp.dot(h.astype(jnp.bfloat16), w2_ref[...],
                preferred_element_type=jnp.float32)
    o_ref[...] = o + b2_ref[...]


def pallas_roi_heads(x, w1, b1, w2, b2, block_m=16):
    """x:(M, K1) -> relu(x@w1+b1) @ w2 + b2, all in one kernel.
    block_m=16 keeps >=2 parallel M blocks for BS*R>=32 (v7x).
    TODO(synk): at real K1 (C*P*P ~ 12.5k) add a K grid axis as in
    pallas_linear for the first matmul."""
    M, K1 = x.shape
    D1 = w1.shape[1]
    N = w2.shape[1]
    bm = min(block_m, _round_up(M, 16))
    Mp = _round_up(M, bm)
    if Mp != M:
        x = jnp.pad(x, ((0, Mp - M), (0, 0)))
    out = pl.pallas_call(
        _roi_heads_kernel,
        out_shape=jax.ShapeDtypeStruct((Mp, N), jnp.float32),
        grid=(Mp // bm,),
        in_specs=[
            pl.BlockSpec((bm, K1), lambda i: (i, 0)),
            pl.BlockSpec((K1, D1), lambda i: (0, 0)),        # grid-invariant
            pl.BlockSpec((1, D1), lambda i: (0, 0)),
            pl.BlockSpec((D1, N), lambda i: (0, 0)),
            pl.BlockSpec((1, N), lambda i: (0, 0)),
        ],
        out_specs=pl.BlockSpec((bm, N), lambda i: (i, 0)),
        compiler_params=_cparams("parallel"),
    )(x, w1, b1.reshape(1, D1).astype(jnp.float32),
      w2, b2.reshape(1, N).astype(jnp.float32))
    return out[:M] if Mp != M else out


def _decode_clamp_kernel(bd_ref, out_ref, *, clamp, xmax, ymax):
    # packed coordinate-major input: rows 0-3 = boxes, rows 4-7 = deltas.
    bd = bd_ref[...]
    x1, y1, x2, y2 = bd[0:1, :], bd[1:2, :], bd[2:3, :], bd[3:4, :]
    dx, dy = bd[4:5, :], bd[5:6, :]
    dw = jnp.minimum(bd[6:7, :], BBOX_XFORM_CLIP)            # bbox_xform_clip
    dh = jnp.minimum(bd[7:8, :], BBOX_XFORM_CLIP)
    w = x2 - x1
    h = y2 - y1
    cx = x1 + 0.5 * w
    cy = y1 + 0.5 * h
    pcx = dx * w + cx
    pcy = dy * h + cy
    pw = jnp.exp(dw) * w
    ph = jnp.exp(dh) * h
    nx1 = pcx - 0.5 * pw
    ny1 = pcy - 0.5 * ph
    nx2 = pcx + 0.5 * pw
    ny2 = pcy + 0.5 * ph
    if clamp:
        nx1 = jnp.clip(nx1, 0.0, xmax)
        nx2 = jnp.clip(nx2, 0.0, xmax)
        ny1 = jnp.clip(ny1, 0.0, ymax)
        ny2 = jnp.clip(ny2, 0.0, ymax)
    out_ref[0:1, :] = nx1
    out_ref[1:2, :] = ny1
    out_ref[2:3, :] = nx2
    out_ref[3:4, :] = ny2


def pallas_decode_clamp_cm(boxes_cm, deltas_cm, clamp_to=None, block_r=2048):
    """BoxCoder.decode (unit weights) + clamp.  boxes/deltas coordinate-major
    (4, R); packed into a single sublane-dense (8, bn) input block."""
    R = boxes_cm.shape[1]
    bn = min(block_r, _round_up(R, LANE))
    Rp = _round_up(R, bn)
    bd = jnp.concatenate([boxes_cm, deltas_cm], axis=0).astype(jnp.float32)
    if Rp != R:
        bd = jnp.pad(bd, ((0, 0), (0, Rp - R)))
    # matches the reference module literally: x <- image_size[0], y <- [1]
    xmax = float(clamp_to[0]) if clamp_to is not None else 0.0
    ymax = float(clamp_to[1]) if clamp_to is not None else 0.0
    out = pl.pallas_call(
        partial(_decode_clamp_kernel, clamp=clamp_to is not None,
                xmax=xmax, ymax=ymax),
        out_shape=jax.ShapeDtypeStruct((4, Rp), jnp.float32),
        grid=(Rp // bn,),
        in_specs=[pl.BlockSpec((8, bn), lambda i: (0, i))],
        out_specs=pl.BlockSpec((4, bn), lambda i: (0, i)),
        compiler_params=_cparams("parallel"),
    )(bd)
    return out[:, :R] if Rp != R else out


# ---------------------------------------------------------------------------
# Plain-JAX glue
# ---------------------------------------------------------------------------
def make_anchors_cm(Hf, Wf, stride, size, ratios):
    """Anchors in coordinate-major layout (4, Hf*Wf*A), (y, x, a) ordering."""
    ys = (jnp.arange(Hf, dtype=jnp.float32) + 0.5) * stride
    xs = (jnp.arange(Wf, dtype=jnp.float32) + 0.5) * stride
    cy, cx = jnp.meshgrid(ys, xs, indexing="ij")
    wa = jnp.asarray([size * float(np.sqrt(1.0 / r)) for r in ratios],
                     jnp.float32)
    ha = jnp.asarray([size * float(np.sqrt(r)) for r in ratios], jnp.float32)
    cx3 = cx[..., None]
    cy3 = cy[..., None]
    x1 = (cx3 - wa / 2).reshape(-1)
    y1 = (cy3 - ha / 2).reshape(-1)
    x2 = (cx3 + wa / 2).reshape(-1)
    y2 = (cy3 + ha / 2).reshape(-1)
    return jnp.stack([x1, y1, x2, y2], axis=0)


def _roi_bilinear_tables(rois_cm, Hf, Wf, P, spatial_scale):
    """Corner indices (int32) + bilinear weights for a simplified RoI-Align
    (sampling_ratio=1, aligned=False).  rois_cm: (4, BS, R) image coords.
    Returns idx (4, M) int32 flat feature-row indices and wts (M, 4) f32."""
    BS, R = rois_cm.shape[1], rois_cm.shape[2]
    M = BS * R * P * P
    x1 = rois_cm[0].reshape(-1) * spatial_scale
    y1 = rois_cm[1].reshape(-1) * spatial_scale
    x2 = rois_cm[2].reshape(-1) * spatial_scale
    y2 = rois_cm[3].reshape(-1) * spatial_scale
    bin_w = (x2 - x1) / P
    bin_h = (y2 - y1) / P
    gridc = jnp.arange(P, dtype=jnp.float32) + 0.5
    sy = y1[:, None] + gridc[None, :] * bin_h[:, None]        # (BS*R, P)
    sx = x1[:, None] + gridc[None, :] * bin_w[:, None]
    yy = jnp.broadcast_to(jnp.clip(sy, 0.0, Hf - 1.0)[:, :, None],
                          (BS * R, P, P))
    xx = jnp.broadcast_to(jnp.clip(sx, 0.0, Wf - 1.0)[:, None, :],
                          (BS * R, P, P))
    y0 = jnp.floor(yy)
    x0 = jnp.floor(xx)
    y1i = jnp.minimum(y0 + 1.0, Hf - 1.0)
    x1i = jnp.minimum(x0 + 1.0, Wf - 1.0)
    ly = yy - y0
    lx = xx - x0
    bidx = jnp.repeat(jnp.arange(BS, dtype=jnp.int32), R)[:, None, None]
    base = bidx * (Hf * Wf)

    def flat(iy, ix):
        return (base + iy.astype(jnp.int32) * Wf
                + ix.astype(jnp.int32)).reshape(M)

    idx = jnp.stack([flat(y0, x0), flat(y0, x1i),
                     flat(y1i, x0), flat(y1i, x1i)], axis=0)
    wts = jnp.stack([((1 - ly) * (1 - lx)).reshape(M),
                     ((1 - ly) * lx).reshape(M),
                     (ly * (1 - lx)).reshape(M),
                     (ly * lx).reshape(M)], axis=1)
    return idx, wts


# ---------------------------------------------------------------------------
# FasterRCNN (eval-mode forward)
# ---------------------------------------------------------------------------
class FasterRCNNPallas:
    def __init__(self, image_size=(16, 16), stride=4, anchor_size=8.0,
                 ratios=(0.5, 1.0, 2.0), backbone_channels=32,
                 rpn_in_channels=32, dim_roi_features=64, num_classes=3,
                 num_rois=16, roi_pooling_output_size=2,
                 max_objs_per_image=8, obj_thresh=0.1, seed=0):
        self.image_size = image_size
        self.stride = stride
        self.anchor_size = anchor_size
        self.ratios = ratios
        self.num_classes = num_classes
        self.num_rois = num_rois
        self.P = roi_pooling_output_size
        self.max_objs = max_objs_per_image
        self.obj_thresh = obj_thresh
        A = len(ratios)
        C = backbone_channels
        Cp = LANE                      # lane-dense feature slab (feedback)
        P = roi_pooling_output_size
        D = dim_roi_features
        self.Cp = Cp

        key = jax.random.PRNGKey(seed)
        ks = jax.random.split(key, 8)
        n = lambda k, s, std: std * jax.random.normal(k, s, jnp.float32)

        # backbone: 4x4/stride4 patchify conv, Cin=4 -> C, output padded to
        # 128 lanes (lane-dense stores; extra channels are exact zeros).
        w_bb = n(ks[0], (stride * stride * 4, C), 0.1)
        self.w_bb = jnp.pad(w_bb, ((0, 0), (0, Cp - C))).astype(jnp.bfloat16)
        self.b_bb = jnp.zeros((Cp,), jnp.float32)

        # RPN 3x3 conv (tap-major, input channels padded to 128; padded rows
        # see exact-zero features so zero weights keep the math identical).
        w_rpn = n(ks[1], (9, C, rpn_in_channels), 0.05)
        self.w_rpn = jnp.pad(
            w_rpn, ((0, 0), (0, Cp - C), (0, 0))).astype(jnp.bfloat16)
        self.b_rpn = jnp.zeros((rpn_in_channels,), jnp.float32)

        # RPN heads fused (cls A + reg A*4), zero-padded to 128 output lanes.
        w_cls = n(ks[2], (rpn_in_channels, A), 0.01)
        w_reg = n(ks[3], (rpn_in_channels, A * 4), 0.01)
        w_rpn_heads = jnp.concatenate([w_cls, w_reg], axis=1)
        self.w_rpn_heads = jnp.pad(
            w_rpn_heads, ((0, 0), (0, LANE - w_rpn_heads.shape[1]))
        ).astype(jnp.bfloat16)
        self.b_rpn_heads = jnp.zeros((LANE,), jnp.float32)

        # roi_head (flatten -> linear -> relu): rows permuted once so it
        # consumes (P,P,Cp)-flattened RoI samples; output padded to 128 lanes.
        w_head = n(ks[4], (C * P * P, D), 0.05)
        w_head = w_head.reshape(C, P, P, D).transpose(1, 2, 0, 3)   # (P,P,C,D)
        w_head = jnp.pad(w_head, ((0, 0), (0, 0), (0, Cp - C), (0, 0)))
        w_head = w_head.reshape(P * P * Cp, D)
        self.w_head = jnp.pad(w_head,
                              ((0, 0), (0, LANE - D))).astype(jnp.bfloat16)
        self.b_head = jnp.zeros((LANE,), jnp.float32)

        # final cls / reg heads fused (std=0.01, zero bias as in the module);
        # K padded to the 128-wide box-features slab, N padded to 128.
        w_fcls = n(ks[5], (D, num_classes + 1), 0.01)
        w_freg = n(ks[6], (D, num_classes * 4), 0.01)
        w_final = jnp.concatenate([w_fcls, w_freg], axis=1)
        w_final = jnp.pad(w_final,
                          ((0, LANE - D), (0, LANE - w_final.shape[1])))
        self.w_final = w_final.astype(jnp.bfloat16)
        self.b_final = jnp.zeros((LANE,), jnp.float32)

    def __call__(self, images_nchw):
        BS = images_nchw.shape[0]
        H, W = self.image_size
        Hf, Wf = H // self.stride, W // self.stride
        A = len(self.ratios)
        NC = self.num_classes
        R = self.num_rois
        P = self.P
        Cp = self.Cp
        s = self.stride

        # --- backbone: patchify conv (K-tiled Pallas matmul) ---------------
        x = jnp.transpose(images_nchw, (0, 2, 3, 1))                 # NHWC
        x = x.reshape(BS, Hf, s, Wf, s, x.shape[-1])
        x = jnp.transpose(x, (0, 1, 3, 2, 4, 5)).reshape(BS * Hf * Wf, -1)
        # block_m=16 -> 2 parallel M blocks (both v7x TensorCores).
        feat = pallas_linear(x, self.w_bb, self.b_bb, relu=True, block_m=16)
        feat_nhwc = feat.reshape(BS, Hf, Wf, Cp)

        # --- RPN: fused 3x3 conv + cls/reg heads (single kernel) -----------
        rpn = pallas_rpn_conv_heads(feat_nhwc, self.w_rpn, self.b_rpn,
                                    self.w_rpn_heads, self.b_rpn_heads)
        rpn_obj = jax.nn.sigmoid(rpn[..., :A]).reshape(BS, Hf * Wf * A)
        rpn_reg_cm = jnp.transpose(
            rpn[..., A:5 * A].reshape(BS * Hf * Wf, A, 4), (2, 0, 1)
        ).reshape(4, BS * Hf * Wf * A)

        anchors_cm = make_anchors_cm(Hf, Wf, s, self.anchor_size, self.ratios)
        anchors_b_cm = jnp.tile(anchors_cm, (1, BS))             # (4, BS*Na)
        props_cm = pallas_decode_clamp_cm(anchors_b_cm, rpn_reg_cm,
                                          clamp_to=self.image_size)
        props_cm = props_cm.reshape(4, BS, Hf * Wf * A)
        # TODO(synk): RPN per-level NMS replaced by plain top-k on objectness.
        _, top_idx = jax.lax.top_k(rpn_obj, R)
        idx3 = jnp.broadcast_to(top_idx[None, :, :], (4, BS, R))
        rois_cm = jnp.take_along_axis(props_cm, idx3, axis=2)    # (4, BS, R)

        # --- RoI-Align as a scalar-prefetch bilinear gather kernel ----------
        gidx, gwts = _roi_bilinear_tables(rois_cm, Hf, Wf, P, 1.0 / s)
        feat_flat = feat_nhwc.reshape(BS * Hf * Wf, Cp)
        roi_samples = pallas_roi_gather(gidx, gwts, feat_flat)   # (BS*R*P*P, Cp)
        roi_feats = roi_samples.reshape(BS * R, P * P * Cp)

        # --- fused roi_head + final cls/reg heads ---------------------------
        preds = pallas_roi_heads(roi_feats, self.w_head, self.b_head,
                                 self.w_final, self.b_final, block_m=16)
        cls_pred = preds[:, :NC + 1].reshape(BS, R, NC + 1)
        reg_pred = preds[:, NC + 1:NC + 1 + 4 * NC]              # (BS*R, 4NC)

        # --- detection post-processing --------------------------------------
        cls_scores = jax.nn.softmax(cls_pred, axis=2)[:, :, 1:]  # drop bg
        deltas_cm = jnp.transpose(reg_pred.reshape(BS * R, NC, 4),
                                  (2, 1, 0)).reshape(4, NC * BS * R)
        boxes_cm = jnp.tile(rois_cm.reshape(4, BS * R), (1, NC))  # class-major
        reg_cm = pallas_decode_clamp_cm(boxes_cm, deltas_cm,
                                        clamp_to=self.image_size)
        reg_bboxes = jnp.transpose(reg_cm.reshape(4, NC, BS, R),
                                   (2, 3, 1, 0)).reshape(BS, R * NC, 4)

        classes_id = jnp.tile(jnp.arange(NC, dtype=jnp.float32), (R,))
        cls_scores = cls_scores.reshape(BS, R * NC)

        # TODO(synk): class-aware batched_nms replaced by thresholded top-k.
        masked = jnp.where(cls_scores >= self.obj_thresh, cls_scores, -1.0)
        topv, topi = jax.lax.top_k(masked, self.max_objs)
        valid = topv >= self.obj_thresh
        scores = jnp.where(valid, topv, -1.0)
        labels = jnp.where(valid, jnp.take(classes_id, topi), -1.0)
        bboxes = jnp.where(valid[..., None],
                           jnp.take_along_axis(reg_bboxes, topi[..., None],
                                               axis=1),
                           -1.0)
        return scores, labels, bboxes


if __name__ == "__main__":
    model = FasterRCNNPallas()
    key = jax.random.PRNGKey(0)
    images = jax.random.normal(key, (2, 4, 16, 16), jnp.float32)   # NCHW
    scores, labels, bboxes = model(images)
    jax.block_until_ready((scores, labels, bboxes))
    assert scores.shape == (2, 8)
    assert labels.shape == (2, 8)
    assert bboxes.shape == (2, 8, 4)
    print("KERNEL_OK")
</pallas_src>

<mosaic_0001>
module attributes {stable_mosaic.version = 11 : i64} {
  func.func @_linear_kernel(%arg0: i32, %arg1: i32, %arg2: memref<16x64xf32, #tpu.memory_space<vmem>>, %arg3: memref<64x128xbf16, #tpu.memory_space<vmem>>, %arg4: memref<1x128xf32, #tpu.memory_space<vmem>>, %arg5: memref<16x128xf32, #tpu.memory_space<vmem>>, %arg6: memref<16x128xf32, #tpu.memory_space<vmem>>) attributes {dimension_semantics = [#tpu.dimension_semantics<parallel>, #tpu.dimension_semantics<arbitrary>], iteration_bounds = array<i64: 2, 1>, scalar_prefetch = 0 : i64, scratch_operands = 1 : i64, tpu.core_type = #tpu.core_type<tc>, window_params = [{transform_indices = @transform_0, window_bounds = array<i64: 16, 64>}, {transform_indices = @transform_1, window_bounds = array<i64: 64, 128>}, {pipeline_mode = #tpu.pipeline_mode<synchronous>, transform_indices = @transform_2, window_bounds = array<i64: 1, 128>}, {transform_indices = @transform_3, window_bounds = array<i64: 16, 128>}]} {
    %c0_i32 = arith.constant 0 : i32
    %0 = arith.cmpi eq, %arg1, %c0_i32 : i32
    %1 = arith.extui %0 : i1 to i32
    %c0_i32_0 = arith.constant 0 : i32
    %2 = arith.cmpi ne, %1, %c0_i32_0 : i32
    scf.if %2 {
      %cst_10 = arith.constant 0.000000e+00 : f32
      %13 = vector.broadcast %cst_10 : f32 to vector<16x128xf32>
      %c0_11 = arith.constant 0 : index
      %c0_12 = arith.constant 0 : index
      %14 = vector.load %arg6[%c0_11, %c0_12] : memref<16x128xf32, #tpu.memory_space<vmem>>, vector<16x128xf32>
      tpu.vector_store %arg6[%c0_11, %c0_12], %13 {strides = array<i32>} : memref<16x128xf32, #tpu.memory_space<vmem>>, vector<16x128xf32>,
    } else {
    }
    %c0 = arith.constant 0 : index
    %c0_1 = arith.constant 0 : index
    %3 = vector.load %arg6[%c0, %c0_1] : memref<16x128xf32, #tpu.memory_space<vmem>>, vector<16x128xf32>
    %c0_2 = arith.constant 0 : index
    %c0_3 = arith.constant 0 : index
    %4 = vector.load %arg2[%c0_2, %c0_3] : memref<16x64xf32, #tpu.memory_space<vmem>>, vector<16x64xf32>
    %5 = arith.truncf %4 : vector<16x64xf32> to vector<16x64xbf16>
    %c0_4 = arith.constant 0 : index
    %c0_5 = arith.constant 0 : index
    %6 = vector.load %arg3[%c0_4, %c0_5] : memref<64x128xbf16, #tpu.memory_space<vmem>>, vector<64x128xbf16>
    %cst = arith.constant dense<0.000000e+00> : vector<16x128xf32>
    %7 = tpu.matmul %5, %6, %cst {dimension_numbers = #tpu.dot_dimension_numbers<[1], [0], [0], [1], [0, 0, 1, 1], [], []>} : vector<16x64xbf16>, vector<64x128xbf16>, vector<16x128xf32> -> vector<16x128xf32>
    %8 = arith.addf %3, %7 : vector<16x128xf32>
    %c0_6 = arith.constant 0 : index
    %c0_7 = arith.constant 0 : index
    %9 = vector.load %arg6[%c0_6, %c0_7] : memref<16x128xf32, #tpu.memory_space<vmem>>, vector<16x128xf32>
    tpu.vector_store %arg6[%c0_6, %c0_7], %8 {strides = array<i32>} : memref<16x128xf32, #tpu.memory_space<vmem>>, vector<16x128xf32>,
    %c0_i32_8 = arith.constant 0 : i32
    %10 = arith.cmpi eq, %arg1, %c0_i32_8 : i32
    %11 = arith.extui %10 : i1 to i32
    %c0_i32_9 = arith.constant 0 : i32
    %12 = arith.cmpi ne, %11, %c0_i32_9 : i32
    scf.if %12 {
      %c0_10 = arith.constant 0 : index
      %c0_11 = arith.constant 0 : index
      %13 = vector.load %arg6[%c0_10, %c0_11] : memref<16x128xf32, #tpu.memory_space<vmem>>, vector<16x128xf32>
      %c0_12 = arith.constant 0 : index
      %c0_13 = arith.constant 0 : index
      %14 = vector.load %arg4[%c0_12, %c0_13] : memref<1x128xf32, #tpu.memory_space<vmem>>, vector<1x128xf32>
      %15 = vector.broadcast %14 : vector<1x128xf32> to vector<16x128xf32>
      %16 = arith.addf %13, %15 : vector<16x128xf32>
      %cst_14 = arith.constant 0.000000e+00 : f32
      %17 = vector.broadcast %cst_14 : f32 to vector<16x128xf32>
      %18 = arith.maximumf %16, %17 : vector<16x128xf32>
      %c0_15 = arith.constant 0 : index
      %c0_16 = arith.constant 0 : index
      %19 = vector.load %arg5[%c0_15, %c0_16] : memref<16x128xf32, #tpu.memory_space<vmem>>, vector<16x128xf32>
      tpu.vector_store %arg5[%c0_15, %c0_16], %18 {strides = array<i32>} : memref<16x128xf32, #tpu.memory_space<vmem>>, vector<16x128xf32>,
    } else {
    }
    return
  }
  func.func @transform_0(%arg0: i32, %arg1: i32) -> (i32, i32) {
    %c0_i32 = arith.constant 0 : i32
    return %arg0, %arg1 : i32, i32
  }
  func.func @transform_1(%arg0: i32, %arg1: i32) -> (i32, i32) {
    %c0_i32 = arith.constant 0 : i32
    %c0_i32_0 = arith.constant 0 : i32
    return %arg1, %c0_i32 : i32, i32
  }
  func.func @transform_2(%arg0: i32, %arg1: i32) -> (i32, i32) {
    %c0_i32 = arith.constant 0 : i32
    %c0_i32_0 = arith.constant 0 : i32
    %c0_i32_1 = arith.constant 0 : i32
    return %c0_i32, %c0_i32_0 : i32, i32
  }
  func.func @transform_3(%arg0: i32, %arg1: i32) -> (i32, i32) {
    %c0_i32 = arith.constant 0 : i32
    %c0_i32_0 = arith.constant 0 : i32
    return %arg0, %c0_i32 : i32, i32
  }
}

</mosaic_0001>

<bundles_post_ra>
// kernel: tpu_custom_call.1
= control target key start
LH: loop header
LB: loop body
LE: loop exit
PB: predicated region body
PF: predicated region fallthrough
CT: control target
= control target key end

     0   :  { %8 = vsyncpa [#allocation4], 0  ;;  %s976_s0 = inlined_call_operand.hbm [shape: f32[32,64], index: 0, kind: input, shape index: {}]   ;;  %s977_s1 = inlined_call_operand.hbm [shape: bf16[64,128], index: 1, kind: input, shape index: {}]   ;;  %s978_s2 = inlined_call_operand.vmem [shape: f32[1,128], index: 2, kind: input, shape index: {}]   ;;  %s979_s3 = inlined_call_operand.hbm [shape: f32[32,128], index: 3, kind: output, shape index: {}]  }
   0x1   :  { %10 = vsyncpa [#allocation4 + $0x1], 0 }
   0x2   :  { %11 = vsyncpa [#allocation7], 0 }
   0x3   :  { %12 = vsyncpa [#allocation5], 0 }
   0x4   :  { %14 = vsyncpa [#allocation5 + $0x1], 0  ;;  %s754_s12 = smov 0   ;;  %s756_s13 = smov 0  }
   0x5   :  { %s758_s14 = smov 0   ;;  %s760_s15 = smov 0  }
   0x6   :  { %s762_s16 = smov 0   ;;  %s764_s17 = smov 0  }
   0x7 LB: > { %s450_s18 = sadd.s32 4294967295, %s721_s17   ;;  %s451_s19 = sadd.s32 4294967294, %s721_s17   ;;  %s721_s17 = sphi %s764_s17, %s20_s17   ;;  %s717_s16 = sphi %s762_s16, %s1003_s16   ;;  %s713_s15 = sphi %s760_s15, %s1002_s15   ;;  %s709_s14 = sphi %s758_s14, %s1001_s14   ;;  %s705_s13 = sphi %s756_s13, %s1000_s13   ;;  %s701_s12 = sphi %s754_s12, %s999_s12  }
   0x8   : > { %p54_p0 = scmp.ne.s32.totalorder %s705_s13, %s701_s12  ;;  %p788_p1 = scmp.eq.s32.totalorder %s450_s18, 0 }
   0x9   : > { %p792_p2 = scmp.eq.s32.totalorder %s450_s18, 1  ;;  %p131_p3 = scmp.eq.s32.totalorder %s451_s19, 1 }
   0xa   : > { %s984_s20 = scalar_select %p788_p1, 1, 0 }
   0xb   : > { %s985_s21 = scalar_select %p792_p2, 1, 0 }
   0xc   : > { %p798_p4 = por %p788_p1, %p54_p0  ;;  %p452_p5 = scmp.ge.s32.totalorder %s721_s17, 1 }
   0xd   : > { %p803_p6 = por %p131_p3, %p54_p0  ;;  %p138_p7 = scmp.lt.s32.totalorder %s721_s17, 3 }
   0xe   : > { %s986_s22 = scalar_select %p798_p4, 1, 0 }
   0xf   : > { %s987_s23 = scalar_select %p803_p6, 1, 0 }
  0x10   : > { %p808_p8 = pnand %p452_p5, %p138_p7  ;;  %s723_s25 = smov [#allocation6]  }
  0x11   : > { %s153_s26 = sshll.u32 %s723_s25, 4  ;;  %s32_s28 = sadd.s32 1, %s717_s16  ;;  %s154_s26 = int_to_ptr.vmem [resolvable:$true] %s153_s26 }
  0x12   : > { %s988_s24 = scalar_select %p808_p8, 1, 0 }
  0x13   : > { %p500_p9 = pneg %p808_p8  ;;  %s577_s4 = scalar_lea.hbm %s977_s1, 512 }
  0x14   : > { %p578_p12 = scmp.ne.s32.totalorder %s977_s1, %s577_s4  ;;  %p584_p5 = scmp.lt.u32.totalorder %s577_s4, %s977_s1 }
  0x15   : > { %p817_p11 = pnand %p500_p9, %p788_p1 }
  0x17   : > { %p579_p13 = pneg %p817_p11 }
  0x19   : > { %p580_p0 = pnand %p579_p13, %p578_p12 }
  0x1b   : > { %p581_p3 = pneg %p580_p0 }
  0x1d   : > { %p586_p7 = pnand %p584_p5, %p581_p3 }
  0x1f   : > { %589 = shalt.err (!%p586_p7)
}
  0x20   : > { %s590_s9 = scalar_lea.vmem %s154_s26, 512  ;;  %p598_p1 = scmp.lt.s32.totalorder %s154_s26, %s154_s26 }
  0x21   : > { %p591_p9 = scmp.ne.s32.totalorder %s154_s26, %s590_s9  ;;  %p599_p4 = scmp.lt.s32.totalorder %s590_s9, %s590_s9 }
  0x23   : > { %p593_p10 = pnand %p591_p9, %p579_p13  ;;  %p600_p8 = por %p599_p4, %p598_p1 }
  0x25   : > { %p594_p6 = pneg %p593_p10 }
  0x27   : > { %p601_p2 = pnand %p600_p8, %p594_p6 }
  0x29   : > { %604 = shalt.err (!%p601_p2)
}
  0x2a   : > { %s724_s10 = smov 64   ;;  %s725_s11 = smov 4  }
  0x2b   : > { %503 = dma.hbm_to_vmem [thread:$0]  (!%p817_p11), %s977_s1, 512, %s154_s26, [#allocation7], %s724_s10, %s724_s10, %s725_s11  }
  0x2c   : > { %p34_p1 = scmp.ge.s32.totalorder %s32_s28, 2  ;;  %s41_s25 = sadd.s32 1, %s709_s14 }
  0x2d   : > { %p48_p2 = scmp.ne.s32.totalorder %s709_s14, %s705_s13  ;;  %p49_p4 = scmp.eq.s32.totalorder %s721_s17, 0 }
  0x2e   : > { %s1005_s28 = smov (%p34_p1, %s32_s28), 0  ;;  %p991_p8 = scmp.ne.s32.totalorder %s985_s21, 0 }
  0x2f   : > { %p844_p6 = por %p49_p4, %p48_p2  ;;  %s36_s27 = ssub.s32 %s717_s16, %s1005_s28 }
  0x30   : > { %p850_p10 = por %p991_p8, %p48_p2  ;;  %p513_p12 = scmp.lt.s32.totalorder %s721_s17, 2 }
  0x31   : > { %p39_p11 = scmp.eq.s32.totalorder %s36_s27, 0  ;;  %s170_s26 = sand.u32 1, %s709_s14  }
  0x32   : > { %s455_s4 = sshll.u32 %s170_s26, 4  ;;  %s473_s6 = sshll.u32 %s717_s16, 8 }
  0x33   : > { %s859_s5 = scalar_select %p39_p11, %s709_s14, %s41_s25  }
  0x34   : > { %s865_s9 = scalar_lea.hbm %s976_s0, %s473_s6  ;;  %s174_s21 = scalar_lea.vmem [#allocation3], %s455_s4 }
  0x35   : > { %s182_s10 = sshll.u32 %s174_s21, 4  ;;  %p871_p13 = pnand %p513_p12, %p844_p6  ;;  %s867_s10 = int_to_ptr.vmem [resolvable:$true] %s182_s10 }
  0x36   : > { %s875_s18 = scalar_lea.sflag [#allocation4], %s170_s26  ;;  %s605_s19 = scalar_lea.hbm %s865_s9, 256 }
  0x37   : > { %p606_p0 = scmp.ne.s32.totalorder %s865_s9, %s605_s19  ;;  %p607_p3 = pneg %p871_p13 }
  0x38   : > { %s610_s29 = scalar_lea.hbm %s976_s0, 512  ;;  %p611_p9 = scmp.lt.u32.totalorder %s865_s9, %s976_s0 }
  0x39   : > { %p608_p5 = pnand %p607_p3, %p606_p0  ;;  %p612_p1 = scmp.lt.u32.totalorder %s610_s29, %s605_s19 }
  0x3a   : > { %p614_p4 = scmp.lt.u32.totalorder %s605_s19, %s865_s9 }
  0x3b   : > { %p609_p7 = pneg %p608_p5  ;;  %p613_p2 = por %p612_p1, %p611_p9 }
  0x3d   : > { %p615_p6 = por %p614_p4, %p613_p2 }
  0x3f   : > { %p616_p8 = pnand %p615_p6, %p609_p7 }
  0x41   : > { %619 = shalt.err (!%p616_p8)
}
  0x42   : > { %s620_s26 = scalar_lea.vmem %s867_s10, 256  ;;  %s726_s7 = smov [#allocation3]  }
  0x43   : > { %p621_p12 = scmp.ne.s32.totalorder %s867_s10, %s620_s26  ;;  %s625_s8 = sshll.u32 %s726_s7, 4  ;;  %s626_s8 = int_to_ptr.vmem [resolvable:$false] %s625_s8 }
  0x44   : > { %s627_s21 = scalar_lea.vmem %s626_s8, 512  ;;  %p628_p5 = scmp.lt.s32.totalorder %s867_s10, %s626_s8 }
  0x45   : > { %p623_p11 = pnand %p621_p12, %p607_p3  ;;  %p629_p9 = scmp.lt.s32.totalorder %s627_s21, %s620_s26 }
  0x47   : > { %p624_p0 = pneg %p623_p11  ;;  %p630_p1 = por %p629_p9, %p628_p5 }
  0x49   : > { %p631_p2 = pnand %p630_p1, %p624_p0 }
  0x4b   : > { %634 = shalt.err (!%p631_p2)
}
  0x4c   : > { %s727_s19 = smov 128   ;;  %s728_s25 = smov 8  }
  0x4d   : > { %507 = dma.hbm_to_vmem [thread:$0]  (!%p871_p13), %s865_s9, 256, %s867_s10, %s875_s18, %s727_s19, %s727_s19, %s728_s25  }
  0x4e   : > { %p994_p3 = scmp.ne.s32.totalorder %s988_s24, 0 }
  0x4f   : > { %s906_s27 = sand.u32 (!%p994_p3), 1, %s705_s13   ;;  %p995_p7 = scmp.ne.s32.totalorder (!%p994_p3), %s986_s22, 0 }
  0x50   : > { %194 = sbr.rel (%p994_p3) target bundleno = 341 (0x155), region = 32  ;;  %s459_s29 = sshll.u32 (!%p994_p3), %s906_s27, 4 }
  0x51   : > { %s197_s4 = scalar_lea.sflag (!%p994_p3), [#allocation4], %s906_s27  ;;  %s200_s6 = scalar_lea.vmem (!%p994_p3), [#allocation3], %s459_s29 }
  0x57   : > { %688 = dma.done.wait (%p995_p7), %s197_s4, 256  }
  0x58   : > { %690 = vsyncadd (%p995_p7), %s197_s4, 4294967040  ;;  %p996_p4 = scmp.ne.s32.totalorder %s984_s20, 0 }
  0x5a   : > { %692 = dma.done.wait (%p996_p4), [#allocation7], 512  }
  0x5b   : > { %694 = vsyncadd (%p996_p4), [#allocation7], 4294966784  ;;  %v729_v0 = vmov 0.0   ;;  %vm730_vm0 = vmmov 0   ;;  %v573_v1 = vld [vmem:[#allocation6] sm:$0xff]   ;;  %v574_v2 = vld [vmem:[#allocation6 + $0x8] sm:$0xff]  }
  0x5c   : > { %480 = vmatprep.subr.bf16.mxu0 %v729_v0  ;;  %488 = vmatprep.mubr.msk.bf16.mxu0 %vm730_vm0, %v729_v0  ;;  %v575_v3 = vld [vmem:[#allocation6 + $0x10] sm:$0xff]   ;;  %v576_v4 = vld [vmem:[#allocation6 + $0x18] sm:$0xff]   ;;  %vm274_vm1 = vcmask 523264   ;;  %v467_v8 = vld [vmem:[%s978_s2] ss:$0 sm:$0xff]  ;;  %s226_s24 = scalar_lea.vmem [#allocation8], %s459_s29 }
  0x5d   : > { %481 = vmatpush3.bf16.msra.mxu0 %v573_v1  ;;  %v239_v5 = vld [vmem:[%s200_s6] sm:$0xff]  ;;  %v240_v6 = vld [vmem:[%s200_s6 + $0x8] sm:$0xff]  ;;  %s355_s9 = sshll.u32 %s226_s24, 4  ;;  %s474_s10 = sshll.u32 %s713_s15, 8  ;;  %s922_s9 = int_to_ptr.vmem [resolvable:$true] %s355_s9 }
  0x5e   : > { %482 = vmatprep.subr.bf16.mxu0 %v729_v0  ;;  %v241_v7 = vpack.c.bf16 %v240_v6, %v239_v5  ;;  %s927_s26 = scalar_lea.hbm %s979_s3, %s474_s10  ;;  %s342_s7 = scalar_lea.sflag [#allocation5], %s906_s27 }
  0x5f   : > { %s635_s8 = scalar_lea.vmem %s922_s9, 256  ;;  %s731_s15 = smov [#allocation8]  }
  0x60   : > { %p636_p13 = scmp.ne.s32.totalorder %s922_s9, %s635_s8  ;;  %s639_s21 = sshll.u32 %s731_s15, 4  ;;  %s640_s21 = int_to_ptr.vmem [resolvable:$false] %s639_s21 }
  0x61   : > { %483 = vmatpush3.bf16.msra.mxu0 %v574_v2  ;;  %s641_s19 = scalar_lea.vmem %s640_s21, 512  ;;  %p642_p12 = scmp.lt.s32.totalorder %s922_s9, %s640_s21 }
  0x62   : > { %484 = vmatprep.subr.bf16.mxu0 %v729_v0  ;;  %p637_p6 = pnand %p636_p13, %p850_p10  ;;  %p643_p11 = scmp.lt.s32.totalorder %s641_s19, %s635_s8 }
  0x64   : > { %p638_p8 = pneg %p637_p6  ;;  %p644_p0 = por %p643_p11, %p642_p12 }
  0x65   : > { %485 = vmatpush3.bf16.msra.mxu0 %v575_v3 }
  0x66   : > { %486 = vmatprep.subr.bf16.mxu0 %v729_v0  ;;  %p645_p5 = pnand %p644_p0, %p638_p8 }
  0x69   : > { %487 = vmatpush3.bf16.msra.mxu0 %v576_v4 }
  0x6c   : > { %489 = vmatmul.mubr.msk.bf16.vlgmr.msra.gmra.mrb[0].mxu0 %vm274_vm1, %v241_v7 }
 0x13f   : > { %v312_v9 = vpop.f32.mrb[0].mxu0 }
 0x140   : > { %v335_v10 = vadd.f32 %v467_v8, %v312_v9  ;;  %v490_v11 = vpop.f32.mrb[1].mxu0 }
 0x141   : > { %v315_v12 = vpop.f32.mrb[2].mxu0 }
 0x142   : > { %v337_v13 = vmax.f32 %v335_v10, 0.0  ;;  %v336_v14 = vadd.f32 %v467_v8, %v315_v12  ;;  %v491_v15 = vpop.f32.mrb[3].mxu0 }
 0x144   : > { %339 = vst [vmem:[%s226_s24] sm:$0xff] %v337_v13  ;;  %v338_v16 = vmax.f32 %v336_v14, 0.0 }
 0x146   : > { %340 = vst [vmem:[%s226_s24 + $0x8] sm:$0xff] %v338_v16 }
 0x147   : > { %648 = shalt.err (!%p645_p5)
}
 0x148   : > { %s649_s25 = scalar_lea.hbm %s927_s26, 256  ;;  %s653_s6 = scalar_lea.hbm %s979_s3, 512 }
 0x149   : > { %p650_p9 = scmp.ne.s32.totalorder %s927_s26, %s649_s25  ;;  %p654_p3 = scmp.lt.u32.totalorder %s927_s26, %s979_s3 }
 0x14a   : > { %p655_p7 = scmp.lt.u32.totalorder %s653_s6, %s649_s25  ;;  %p657_p13 = scmp.lt.u32.totalorder %s649_s25, %s927_s26 }
 0x14b   : > { %p651_p1 = pnand %p650_p9, %p850_p10 }
 0x14c   : > { %p656_p4 = por %p655_p7, %p654_p3 }
 0x14d   : > { %p652_p2 = pneg %p651_p1 }
 0x14e   : > { %p658_p6 = por %p657_p13, %p656_p4 }
 0x150   : > { %p659_p8 = pnand %p658_p6, %p652_p2 }
 0x152   : > { %662 = shalt.err (!%p659_p8)
}
 0x153   : > { %s732_s24 = smov 128   ;;  %s733_s10 = smov 8  }
 0x154   : > { %498 = dma.vmem_to_hbm [thread:$0]  (%p850_p10), %s922_s9, 256, %s927_s26, %s342_s7, %s732_s24, %s732_s24, %s733_s10  }
 0x155 PF: > { %s370_s11 = sand.u32 1, %s701_s12   ;;  %p997_p12 = scmp.ne.s32.totalorder %s987_s23, 0 }
 0x156   : > { %p998_p11 = scmp.ge.s32.totalorder %s721_s17, 2  ;;  %s371_s18 = scalar_lea.sflag [#allocation5], %s370_s11 }
 0x158   : > { %p509_p0 = pnand %p998_p11, %p997_p12 }
 0x15a   : > { %696 = dma.done.wait (!%p509_p0), %s371_s18, 256  }
 0x15b   : > { %698 = vsyncadd (!%p509_p0), %s371_s18, 4294967040  ;;  %s20_s17 = sadd.s32 1, %s721_s17   ;;  %s999_s12 = smov %s705_s13 }
 0x15c   : > { %p17_p5 = scmp.ge.s32.totalorder %s20_s17, 4   ;;  %s1000_s13 = smov %s709_s14 }
 0x15d   : > { %s1001_s14 = smov %s859_s5  ;;  %s1002_s15 = smov %s717_s16 }
 0x15e   : > { %s1003_s16 = smov %s1005_s28  ;;  %19 = sbr.rel (!%p17_p5) target bundleno = 7 (0x7), region = 90 }
 0x165   :  { %376 = vsyncpa [#allocation4], 1 }
 0x166   :  { %378 = vsyncpa [#allocation4 + $0x1], 1 }
 0x167   :  { %379 = vsyncpa [#allocation7], 1 }
 0x168   :  { %380 = vsyncpa [#allocation5], 1 }
 0x169   :  { %382 = vsyncpa [#allocation5 + $0x1], 1 }

</bundles_post_ra>
